<compile_context>
chip_gen: v5e
topology: v5e:2x2
jax: 0.10.0
libtpu: 0.0.40
codegen_flags: <defaults>
</compile_context>

<pallas_src>
import functools

import jax
import jax.numpy as jnp
from jax import lax
from jax.experimental import pallas as pl
from jax.experimental.pallas import tpu as pltpu

HIDDEN = 128   # fixed by the module (Linear(..., 128), LSTMCell(128, 128))
H = HIDDEN


def _round_up(x, m):
    return -(-x // m) * m


def _pad_rows(x, rows):
    if x.shape[0] == rows:
        return x
    return jnp.concatenate(
        [x, jnp.zeros((rows - x.shape[0], x.shape[1]), jnp.float32)], axis=0)


def _pad_cols(x, cols):
    if x.shape[1] == cols:
        return x
    return jnp.concatenate(
        [x, jnp.zeros((x.shape[0], cols - x.shape[1]), jnp.float32)], axis=1)


def pack_params(params, F, B, A):
    """Pack the 13 weight/bias arrays into three pre-concatenated f32 slabs (once)."""
    assert A <= H, "action_space must fit in one 128-lane block"
    F_pad = _round_up(F, 128)        # lane-dense state input / MXU-native K for linear1
    B_pad = _round_up(B, 8)

    # slab_g (512 lanes): rows [0:128) w_ih, [128:256) w_hh, row 256 b_ih+b_hh, pad -> (264, 512)
    slab_g = jnp.concatenate(
        [params["w_ih"], params["w_hh"], params["b_ih"] + params["b_hh"],
         jnp.zeros((7, 4 * H), jnp.float32)], axis=0)

    # slab_h (256 lanes): rows [0:128) [w_com | w_q], row 128 [0 | b_q], pad -> (136, 256)
    # value head folded into advantage head (exact: q = val + adv is linear).
    w_q = params["w_adv"] + jnp.broadcast_to(params["w_val"], (H, A))
    b_q = params["b_adv"] + params["b_val"]
    w_heads = jnp.concatenate([params["w_com"], _pad_cols(w_q, H)], axis=1)
    b_heads = jnp.concatenate([jnp.zeros((1, H), jnp.float32), _pad_cols(b_q, H)], axis=1)
    slab_h = jnp.concatenate(
        [w_heads, b_heads, jnp.zeros((7, 2 * H), jnp.float32)], axis=0)

    # slab_b (128 lanes): [w1 (F_pad rows, zero-padded); b1; 7 pad rows; h0 (B_pad); c0 (B_pad)]
    w1 = _pad_rows(params["w1"], F_pad)
    h0 = _pad_rows(params["h0"], B_pad)
    c0 = _pad_rows(params["c0"], B_pad)
    slab_b = jnp.concatenate(
        [w1, params["b1"], jnp.zeros((7, H), jnp.float32), h0, c0], axis=0)

    off = {"F_pad": F_pad,
           "b1": F_pad,
           "h0": F_pad + 8,
           "c0": F_pad + 8 + B_pad}
    return (slab_g.astype(jnp.float32), slab_b.astype(jnp.float32),
            slab_h.astype(jnp.float32), off)


def _default_fuse_gates():
    # v5e's MXU is 128x128, so a fused K=256 gate dot buys nothing there and the
    # lane-concat copy costs; split into two K=128 dots on v5e, fuse on v6e/v7x.
    try:
        kind = jax.devices()[0].device_kind.lower()
    except Exception:
        return True
    return not ("v5 lite" in kind or "v5lite" in kind or "v5e" in kind)


def make_kernel(B, off, fuse_gates):
    F_pad = off["F_pad"]
    b1_off, h0_off, c0_off = off["b1"], off["h0"], off["c0"]

    def kernel(state_ref, comm_ref, cprev_ref,
               slab_g_ref, slab_b_ref, slab_h_ref,
               out_ref, h_scr, c_scr):
        # TODO(synk): the module's self.start flag / host-side h_t,c_t caching is
        # control flow outside the graph; t==0 implements the start=True path and
        # later grid steps carry ht/ct in VMEM scratch (the intended DRQN rollout).
        @pl.when(pl.program_id(0) == 0)
        def _():
            h_scr[...] = slab_b_ref[h0_off:h0_off + B, :]
            c_scr[...] = slab_b_ref[c0_off:c0_off + B, :]

        # ---- linear1 + ReLU : (B, F_pad) @ (F_pad, 128), zero-padded K (exact) ----
        x = state_ref[...]                                                   # (B, F_pad)
        input_t = jnp.maximum(
            jnp.dot(x, slab_b_ref[0:F_pad, :], preferred_element_type=jnp.float32)
            + slab_b_ref[b1_off:b1_off + 1, :], 0.0)                         # (B, 128)

        # ---- comms = sum(-(comm.T @ C_prev) @ comm, -1), lane-dense rewrite:
        #      P = C_prev @ comm ; s = rowsum(P) ; comms = -colsum(s * comm) ----
        comm = comm_ref[...]                                                 # (B, 128)
        cp = cprev_ref[...]                                                  # (B, B)
        p_mat = jnp.dot(cp, comm, preferred_element_type=jnp.float32)        # (B, 128)
        s = jnp.sum(p_mat, axis=-1, keepdims=True)                           # (B, 1)
        comms = -jnp.sum(s * comm, axis=0, keepdims=True)                    # (1, 128)
        input_t = input_t + comms                                            # torch (B,128)+(128,) bcast

        # ---- LSTMCell (PyTorch gate order i,f,g,o) ----
        h_prev = h_scr[...]                                                  # (B, 128)
        c_prev = c_scr[...]                                                  # (B, 128)
        if fuse_gates:
            # one K=256 MXU pass (native on v6e/v7x 256-wide MXU)
            xh = jnp.concatenate([input_t, h_prev], axis=-1)                 # (B, 256)
            gates = (jnp.dot(xh, slab_g_ref[0:2 * H, :],
                             preferred_element_type=jnp.float32)
                     + slab_g_ref[2 * H:2 * H + 1, :])                       # (B, 512)
        else:
            # two independent K=128 dots (v5e 128x128 MXU), no lane-concat copy
            gates = (jnp.dot(input_t, slab_g_ref[0:H, :],
                             preferred_element_type=jnp.float32)
                     + jnp.dot(h_prev, slab_g_ref[H:2 * H, :],
                               preferred_element_type=jnp.float32)
                     + slab_g_ref[2 * H:2 * H + 1, :])                       # (B, 512)

        i_g = jax.nn.sigmoid(gates[:, 0 * H:1 * H])
        f_g = jax.nn.sigmoid(gates[:, 1 * H:2 * H])
        g_g = jnp.tanh(gates[:, 2 * H:3 * H])
        o_g = jax.nn.sigmoid(gates[:, 3 * H:4 * H])
        ct = f_g * c_prev + i_g * g_g
        ht = o_g * jnp.tanh(ct)

        # ---- fused heads: one (B,128)@(128,256) dot -> [comm_t | q_pad] ----
        heads = (jnp.dot(ht, slab_h_ref[0:H, :], preferred_element_type=jnp.float32)
                 + slab_h_ref[H:H + 1, :])                                   # (B, 256)

        # carry state for the next grid step
        h_scr[...] = ht
        c_scr[...] = ct

        # ---- single lane-dense per-step output: [ht | ct | comm_t | q padded] ----
        out_ref[...] = jnp.concatenate([ht, ct, heads], axis=-1)             # (B, 512)

    return kernel


def build_beenet2(params, input_shape, action_space, fuse_gates=None):
    """Pack params once; return (step, rollout) callables.

    step(state, comm, c_prev)                 -> (q, comm_t, ht, ct)      [module forward, start=True]
    rollout(states, comms, c_prevs) over T    -> (q, comm_t, ht, ct) each with leading T axis;
      weights stay VMEM-resident across the grid and ht/ct are carried in scratch.
    """
    B, C, Hh, Ww = input_shape
    F = C * Hh * Ww
    A = action_space
    if fuse_gates is None:
        fuse_gates = _default_fuse_gates()

    slab_g, slab_b, slab_h, off = pack_params(params, F, B, A)
    F_pad = off["F_pad"]
    kernel = make_kernel(B, off, fuse_gates)

    @functools.lru_cache(maxsize=None)
    def _run_for_T(T):
        grid_spec = pltpu.PrefetchScalarGridSpec(
            num_scalar_prefetch=0,
            grid=(T,),
            in_specs=[
                # per-step inputs: one (B, ...) block per grid step
                pl.BlockSpec((None, B, F_pad), lambda t: (t, 0, 0)),
                pl.BlockSpec((None, B, H), lambda t: (t, 0, 0)),
                pl.BlockSpec((None, B, B), lambda t: (t, 0, 0)),
                # weight slabs: constant block index -> DMA'd once, VMEM-resident
                pl.BlockSpec(slab_g.shape, lambda t: (0, 0)),
                pl.BlockSpec(slab_b.shape, lambda t: (0, 0)),
                pl.BlockSpec(slab_h.shape, lambda t: (0, 0)),
            ],
            out_specs=pl.BlockSpec((None, B, 4 * H), lambda t: (t, 0, 0)),
            scratch_shapes=[pltpu.VMEM((B, H), jnp.float32),   # ht carry
                            pltpu.VMEM((B, H), jnp.float32)],  # ct carry
        )
        call = pl.pallas_call(
            kernel,
            out_shape=jax.ShapeDtypeStruct((T, B, 4 * H), jnp.float32),
            grid_spec=grid_spec,
            # T axis is a sequential carry -> arbitrary.
            # TODO(synk): for multiple independent environments/agents add a leading
            # "parallel" grid axis (or larger B) to fill MXU rows and, on v7x, both TCs.
            compiler_params=pltpu.CompilerParams(
                dimension_semantics=("arbitrary",)),
        )

        @jax.jit
        def run(states, comms, c_prevs):
            x = states.reshape(T, B, -1).astype(jnp.float32)
            x = jnp.pad(x, ((0, 0), (0, 0), (0, F_pad - F)))                 # unmasked 128-lane tile
            out = call(x, comms.astype(jnp.float32), c_prevs.astype(jnp.float32),
                       slab_g, slab_b, slab_h)
            ht = out[..., 0:H]
            ct = out[..., H:2 * H]
            comm_t = out[..., 2 * H:3 * H]
            q = out[..., 3 * H:3 * H + A]
            return q, comm_t, ht, ct

        return run

    def rollout(states, comms, c_prevs):
        return _run_for_T(states.shape[0])(states, comms, c_prevs)

    def step(state, comm, c_prev):
        q, comm_t, ht, ct = rollout(state[None], comm[None], c_prev[None])
        return q[0], comm_t[0], ht[0], ct[0]

    return step, rollout


# ------------------------- pure-JAX references -------------------------

def ref_forward(state, comm, c_prev, p, h_in, c_in):
    """Matches the PyTorch forward with LSTM state (h_in, c_in)."""
    x = state.reshape(state.shape[0], -1)
    inp = jnp.maximum(x @ p["w1"] + p["b1"], 0.0)
    comms = jnp.sum(-(comm.T @ c_prev) @ comm, axis=-1)              # (128,)
    inp = inp + comms
    gates = inp @ p["w_ih"] + p["b_ih"] + h_in @ p["w_hh"] + p["b_hh"]
    i = jax.nn.sigmoid(gates[:, :H])
    f = jax.nn.sigmoid(gates[:, H:2 * H])
    g = jnp.tanh(gates[:, 2 * H:3 * H])
    o = jax.nn.sigmoid(gates[:, 3 * H:])
    ct = f * c_in + i * g
    ht = o * jnp.tanh(ct)
    comm_t = ht @ p["w_com"]
    q = (ht @ p["w_val"] + p["b_val"]) + (ht @ p["w_adv"] + p["b_adv"])
    return q, comm_t, ht, ct


def ref_rollout(states, comms, c_prevs, p):
    h, c = p["h0"], p["c0"]
    qs, cms, hts, cts = [], [], [], []
    for t in range(states.shape[0]):
        q, cm, h, c = ref_forward(states[t], comms[t], c_prevs[t], p, h, c)
        qs.append(q), cms.append(cm), hts.append(h), cts.append(c)
    return jnp.stack(qs), jnp.stack(cms), jnp.stack(hts), jnp.stack(cts)


if __name__ == "__main__":
    # inputdim = (B, H, W) -> linear1 in-features = H*W*3 ; h_0 shape = (B, 128)
    B, Hh, Ww, A = 8, 4, 4, 4
    T = 4
    F = Hh * Ww * 3  # 48

    key = jax.random.PRNGKey(0)
    ks = jax.random.split(key, 16)
    norm = lambda k, shp, s=0.1: (s * jax.random.normal(k, shp)).astype(jnp.float32)

    # NOTE: real torch.nn.Linear / LSTMCell weights are (out, in); transpose to this
    # (in, out) layout (gate blocks i,f,g,o preserved) when porting.
    params = {
        "w1":    norm(ks[0], (F, H)),
        "b1":    norm(ks[1], (1, H)),
        "w_ih":  norm(ks[2], (H, 4 * H)),
        "w_hh":  norm(ks[3], (H, 4 * H)),
        "b_ih":  norm(ks[4], (1, 4 * H)),
        "b_hh":  norm(ks[5], (1, 4 * H)),
        "h0":    jax.random.normal(ks[6], (B, H)).astype(jnp.float32),   # nn.Parameter(randn)
        "c0":    jnp.zeros((B, H), jnp.float32),                         # torch.zeros
        "w_com": norm(ks[7], (H, H)),                                    # bias=False
        "w_adv": norm(ks[8], (H, A)),
        "b_adv": norm(ks[9], (1, A)),
        "w_val": norm(ks[10], (H, 1)),
        "b_val": norm(ks[11], (1, 1)),
    }

    # Single-step inputs: state NCHW (B, 3, H, W); comm (B, 128); C_prev (B, B)
    state = jax.random.normal(ks[12], (B, 3, Hh, Ww)).astype(jnp.float32)
    ik1, ik2 = jax.random.split(ks[13])
    comm = (0.1 * jax.random.normal(ik1, (B, H))).astype(jnp.float32)
    c_prev = (0.1 * jax.random.normal(ik2, (B, B))).astype(jnp.float32)

    step, rollout = build_beenet2(params, (B, 3, Hh, Ww), A)

    # TODO(synk): the module's print(input_t.shape)/print(comms.shape) debug prints
    # are host-side and omitted from the kernel.

    # ---- single-step forward (== module forward, start=True path) ----
    q, comm_t, ht, ct = step(state, comm, c_prev)
    jax.block_until_ready((q, comm_t, ht, ct))
    q_r, comm_t_r, ht_r, ct_r = ref_forward(state, comm, c_prev, params,
                                            params["h0"], params["c0"])
    assert q.shape == (B, A) and comm_t.shape == (B, H)
    assert ht.shape == (B, H) and ct.shape == (B, H)
    assert jnp.allclose(q, q_r, atol=1e-4, rtol=1e-4)
    assert jnp.allclose(comm_t, comm_t_r, atol=1e-4, rtol=1e-4)
    assert jnp.allclose(ht, ht_r, atol=1e-4, rtol=1e-4)
    assert jnp.allclose(ct, ct_r, atol=1e-4, rtol=1e-4)

    # ---- T-step rollout in one launch (weights resident, ht/ct carried in VMEM) ----
    rk = jax.random.split(ks[14], 3)
    states_T = jax.random.normal(rk[0], (T, B, 3, Hh, Ww)).astype(jnp.float32)
    comms_T = (0.1 * jax.random.normal(rk[1], (T, B, H))).astype(jnp.float32)
    c_prevs_T = (0.1 * jax.random.normal(rk[2], (T, B, B))).astype(jnp.float32)

    qT, comm_tT, htT, ctT = rollout(states_T, comms_T, c_prevs_T)
    jax.block_until_ready((qT, comm_tT, htT, ctT))
    qT_r, comm_tT_r, htT_r, ctT_r = ref_rollout(states_T, comms_T, c_prevs_T, params)
    assert qT.shape == (T, B, A) and comm_tT.shape == (T, B, H)
    assert jnp.allclose(qT, qT_r, atol=5e-4, rtol=5e-4)
    assert jnp.allclose(comm_tT, comm_tT_r, atol=5e-4, rtol=5e-4)
    assert jnp.allclose(htT, htT_r, atol=5e-4, rtol=5e-4)
    assert jnp.allclose(ctT, ctT_r, atol=5e-4, rtol=5e-4)

    print("KERNEL_OK")
</pallas_src>

<mosaic_0001>
module attributes {stable_mosaic.version = 11 : i64} {
  func.func @kernel(%arg0: i32, %arg1: memref<1x8x128xf32, #tpu.memory_space<vmem>>, %arg2: memref<1x8x128xf32, #tpu.memory_space<vmem>>, %arg3: memref<1x8x8xf32, #tpu.memory_space<vmem>>, %arg4: memref<264x512xf32, #tpu.memory_space<vmem>>, %arg5: memref<152x128xf32, #tpu.memory_space<vmem>>, %arg6: memref<136x256xf32, #tpu.memory_space<vmem>>, %arg7: memref<1x8x512xf32, #tpu.memory_space<vmem>>, %arg8: memref<8x128xf32, #tpu.memory_space<vmem>>, %arg9: memref<8x128xf32, #tpu.memory_space<vmem>>) attributes {dimension_semantics = [#tpu.dimension_semantics<arbitrary>], iteration_bounds = array<i64: 1>, scalar_prefetch = 0 : i64, scratch_operands = 2 : i64, tpu.core_type = #tpu.core_type<tc>, window_params = [{transform_indices = @transform_0, window_bounds = array<i64: 1, 8, 128>}, {transform_indices = @transform_1, window_bounds = array<i64: 1, 8, 128>}, {transform_indices = @transform_2, window_bounds = array<i64: 1, 8, 8>}, {pipeline_mode = #tpu.pipeline_mode<synchronous>, transform_indices = @transform_3, window_bounds = array<i64: 264, 512>}, {pipeline_mode = #tpu.pipeline_mode<synchronous>, transform_indices = @transform_4, window_bounds = array<i64: 152, 128>}, {pipeline_mode = #tpu.pipeline_mode<synchronous>, transform_indices = @transform_5, window_bounds = array<i64: 136, 256>}, {transform_indices = @transform_6, window_bounds = array<i64: 1, 8, 512>}]} {
    %c0_i32 = arith.constant 0 : i32
    %0 = arith.cmpi eq, %arg0, %c0_i32 : i32
    %1 = arith.extui %0 : i1 to i32
    %c0_i32_0 = arith.constant 0 : i32
    %2 = arith.cmpi ne, %1, %c0_i32_0 : i32
    scf.if %2 {
      %c136 = arith.constant 136 : index
      %c0_40 = arith.constant 0 : index
      %71 = vector.load %arg5[%c136, %c0_40] : memref<152x128xf32, #tpu.memory_space<vmem>>, vector<8x128xf32>
      %c0_41 = arith.constant 0 : index
      %c0_42 = arith.constant 0 : index
      %72 = vector.load %arg8[%c0_41, %c0_42] : memref<8x128xf32, #tpu.memory_space<vmem>>, vector<8x128xf32>
      tpu.vector_store %arg8[%c0_41, %c0_42], %71 {strides = array<i32>} : memref<8x128xf32, #tpu.memory_space<vmem>>, vector<8x128xf32>,
      %c144 = arith.constant 144 : index
      %c0_43 = arith.constant 0 : index
      %73 = vector.load %arg5[%c144, %c0_43] : memref<152x128xf32, #tpu.memory_space<vmem>>, vector<8x128xf32>
      %c0_44 = arith.constant 0 : index
      %c0_45 = arith.constant 0 : index
      %74 = vector.load %arg9[%c0_44, %c0_45] : memref<8x128xf32, #tpu.memory_space<vmem>>, vector<8x128xf32>
      tpu.vector_store %arg9[%c0_44, %c0_45], %73 {strides = array<i32>} : memref<8x128xf32, #tpu.memory_space<vmem>>, vector<8x128xf32>,
    } else {
    }
    %c0 = arith.constant 0 : index
    %c0_1 = arith.constant 0 : index
    %c0_2 = arith.constant 0 : index
    %3 = vector.load %arg1[%c0, %c0_1, %c0_2] : memref<1x8x128xf32, #tpu.memory_space<vmem>>, vector<1x8x128xf32>
    %4 = vector.shape_cast %3 : vector<1x8x128xf32> to vector<8x128xf32>
    %c0_3 = arith.constant 0 : index
    %c0_4 = arith.constant 0 : index
    %5 = vector.load %arg5[%c0_3, %c0_4] : memref<152x128xf32, #tpu.memory_space<vmem>>, vector<128x128xf32>
    %cst = arith.constant dense<0.000000e+00> : vector<8x128xf32>
    %6 = tpu.matmul %4, %5, %cst {dimension_numbers = #tpu.dot_dimension_numbers<[1], [0], [0], [1], [0, 0, 1, 1], [], []>} : vector<8x128xf32>, vector<128x128xf32>, vector<8x128xf32> -> vector<8x128xf32>
    %c128 = arith.constant 128 : index
    %c0_5 = arith.constant 0 : index
    %7 = vector.load %arg5[%c128, %c0_5] : memref<152x128xf32, #tpu.memory_space<vmem>>, vector<1x128xf32>
    %8 = vector.broadcast %7 : vector<1x128xf32> to vector<8x128xf32>
    %9 = arith.addf %6, %8 : vector<8x128xf32>
    %cst_6 = arith.constant 0.000000e+00 : f32
    %10 = vector.broadcast %cst_6 : f32 to vector<8x128xf32>
    %11 = arith.maximumf %9, %10 : vector<8x128xf32>
    %c0_7 = arith.constant 0 : index
    %c0_8 = arith.constant 0 : index
    %c0_9 = arith.constant 0 : index
    %12 = vector.load %arg2[%c0_7, %c0_8, %c0_9] : memref<1x8x128xf32, #tpu.memory_space<vmem>>, vector<1x8x128xf32>
    %13 = vector.shape_cast %12 : vector<1x8x128xf32> to vector<8x128xf32>
    %c0_10 = arith.constant 0 : index
    %c0_11 = arith.constant 0 : index
    %c0_12 = arith.constant 0 : index
    %14 = vector.load %arg3[%c0_10, %c0_11, %c0_12] : memref<1x8x8xf32, #tpu.memory_space<vmem>>, vector<1x8x8xf32>
    %15 = vector.shape_cast %14 : vector<1x8x8xf32> to vector<8x8xf32>
    %cst_13 = arith.constant dense<0.000000e+00> : vector<8x128xf32>
    %16 = tpu.matmul %15, %13, %cst_13 {dimension_numbers = #tpu.dot_dimension_numbers<[1], [0], [0], [1], [0, 0, 1, 1], [], []>} : vector<8x8xf32>, vector<8x128xf32>, vector<8x128xf32> -> vector<8x128xf32>
    %cst_14 = arith.constant dense<0.000000e+00> : vector<8xf32>
    %17 = vector.multi_reduction <add>, %16, %cst_14 [1] : vector<8x128xf32> to vector<8xf32>
    %18 = vector.shape_cast %17 : vector<8xf32> to vector<8x1xf32>
    %19 = vector.broadcast %18 : vector<8x1xf32> to vector<8x128xf32>
    %20 = arith.mulf %19, %13 : vector<8x128xf32>
    %cst_15 = arith.constant dense<0.000000e+00> : vector<128xf32>
    %21 = vector.multi_reduction <add>, %20, %cst_15 [0] : vector<8x128xf32> to vector<128xf32>
    %22 = vector.shape_cast %21 : vector<128xf32> to vector<1x128xf32>
    %cst_16 = arith.constant 0.000000e+00 : f32
    %23 = vector.broadcast %cst_16 : f32 to vector<1x128xf32>
    %24 = arith.subf %23, %22 : vector<1x128xf32>
    %25 = vector.broadcast %24 : vector<1x128xf32> to vector<8x128xf32>
    %26 = arith.addf %11, %25 : vector<8x128xf32>
    %c0_17 = arith.constant 0 : index
    %c0_18 = arith.constant 0 : index
    %27 = vector.load %arg8[%c0_17, %c0_18] : memref<8x128xf32, #tpu.memory_space<vmem>>, vector<8x128xf32>
    %c0_19 = arith.constant 0 : index
    %c0_20 = arith.constant 0 : index
    %28 = vector.load %arg9[%c0_19, %c0_20] : memref<8x128xf32, #tpu.memory_space<vmem>>, vector<8x128xf32>
    %29 = tpu.concatenate %26, %27 in 1 : vector<8x128xf32>, vector<8x128xf32> -> vector<8x256xf32>
    %c0_21 = arith.constant 0 : index
    %c0_22 = arith.constant 0 : index
    %30 = vector.load %arg4[%c0_21, %c0_22] : memref<264x512xf32, #tpu.memory_space<vmem>>, vector<256x512xf32>
    %cst_23 = arith.constant dense<0.000000e+00> : vector<8x512xf32>
    %31 = tpu.matmul %29, %30, %cst_23 {dimension_numbers = #tpu.dot_dimension_numbers<[1], [0], [0], [1], [0, 0, 1, 1], [], []>} : vector<8x256xf32>, vector<256x512xf32>, vector<8x512xf32> -> vector<8x512xf32>
    %c256 = arith.constant 256 : index
    %c0_24 = arith.constant 0 : index
    %32 = vector.load %arg4[%c256, %c0_24] : memref<264x512xf32, #tpu.memory_space<vmem>>, vector<1x512xf32>
    %33 = vector.broadcast %32 : vector<1x512xf32> to vector<8x512xf32>
    %34 = arith.addf %31, %33 : vector<8x512xf32>
    %35 = vector.extract_strided_slice %34 {offsets = [0, 0], sizes = [8, 128], strides = [1, 1]} : vector<8x512xf32> to vector<8x128xf32>
    %36 = arith.negf %35 : vector<8x128xf32>
    %37 = math.exp %36 : vector<8x128xf32>
    %cst_25 = arith.constant 1.000000e+00 : f32
    %38 = vector.broadcast %cst_25 : f32 to vector<8x128xf32>
    %39 = arith.addf %38, %37 : vector<8x128xf32>
    %40 = arith.divf %38, %39 : vector<8x128xf32>
    %41 = vector.extract_strided_slice %34 {offsets = [0, 128], sizes = [8, 128], strides = [1, 1]} : vector<8x512xf32> to vector<8x128xf32>
    %42 = arith.negf %41 : vector<8x128xf32>
    %43 = math.exp %42 : vector<8x128xf32>
    %cst_26 = arith.constant 1.000000e+00 : f32
    %44 = vector.broadcast %cst_26 : f32 to vector<8x128xf32>
    %45 = arith.addf %44, %43 : vector<8x128xf32>
    %46 = arith.divf %44, %45 : vector<8x128xf32>
    %47 = vector.extract_strided_slice %34 {offsets = [0, 256], sizes = [8, 128], strides = [1, 1]} : vector<8x512xf32> to vector<8x128xf32>
    %48 = math.tanh %47 : vector<8x128xf32>
    %49 = vector.extract_strided_slice %34 {offsets = [0, 384], sizes = [8, 128], strides = [1, 1]} : vector<8x512xf32> to vector<8x128xf32>
    %50 = arith.negf %49 : vector<8x128xf32>
    %51 = math.exp %50 : vector<8x128xf32>
    %cst_27 = arith.constant 1.000000e+00 : f32
    %52 = vector.broadcast %cst_27 : f32 to vector<8x128xf32>
    %53 = arith.addf %52, %51 : vector<8x128xf32>
    %54 = arith.divf %52, %53 : vector<8x128xf32>
    %55 = arith.mulf %46, %28 : vector<8x128xf32>
    %56 = arith.mulf %40, %48 : vector<8x128xf32>
    %57 = arith.addf %55, %56 : vector<8x128xf32>
    %58 = math.tanh %57 : vector<8x128xf32>
    %59 = arith.mulf %54, %58 : vector<8x128xf32>
    %c0_28 = arith.constant 0 : index
    %c0_29 = arith.constant 0 : index
    %60 = vector.load %arg6[%c0_28, %c0_29] : memref<136x256xf32, #tpu.memory_space<vmem>>, vector<128x256xf32>
    %cst_30 = arith.constant dense<0.000000e+00> : vector<8x256xf32>
    %61 = tpu.matmul %59, %60, %cst_30 {dimension_numbers = #tpu.dot_dimension_numbers<[1], [0], [0], [1], [0, 0, 1, 1], [], []>} : vector<8x128xf32>, vector<128x256xf32>, vector<8x256xf32> -> vector<8x256xf32>
    %c128_31 = arith.constant 128 : index
    %c0_32 = arith.constant 0 : index
    %62 = vector.load %arg6[%c128_31, %c0_32] : memref<136x256xf32, #tpu.memory_space<vmem>>, vector<1x256xf32>
    %63 = vector.broadcast %62 : vector<1x256xf32> to vector<8x256xf32>
    %64 = arith.addf %61, %63 : vector<8x256xf32>
    %c0_33 = arith.constant 0 : index
    %c0_34 = arith.constant 0 : index
    %65 = vector.load %arg8[%c0_33, %c0_34] : memref<8x128xf32, #tpu.memory_space<vmem>>, vector<8x128xf32>
    tpu.vector_store %arg8[%c0_33, %c0_34], %59 {strides = array<i32>} : memref<8x128xf32, #tpu.memory_space<vmem>>, vector<8x128xf32>,
    %c0_35 = arith.constant 0 : index
    %c0_36 = arith.constant 0 : index
    %66 = vector.load %arg9[%c0_35, %c0_36] : memref<8x128xf32, #tpu.memory_space<vmem>>, vector<8x128xf32>
    tpu.vector_store %arg9[%c0_35, %c0_36], %57 {strides = array<i32>} : memref<8x128xf32, #tpu.memory_space<vmem>>, vector<8x128xf32>,
    %67 = tpu.concatenate %59, %57, %64 in 1 : vector<8x128xf32>, vector<8x128xf32>, vector<8x256xf32> -> vector<8x512xf32>
    %c0_37 = arith.constant 0 : index
    %c0_38 = arith.constant 0 : index
    %c0_39 = arith.constant 0 : index
    %68 = vector.load %arg7[%c0_37, %c0_38, %c0_39] : memref<1x8x512xf32, #tpu.memory_space<vmem>>, vector<1x8x512xf32>
    %69 = vector.shape_cast %68 : vector<1x8x512xf32> to vector<8x512xf32>
    %70 = vector.shape_cast %67 : vector<8x512xf32> to vector<1x8x512xf32>
    tpu.vector_store %arg7[%c0_37, %c0_38, %c0_39], %70 {strides = array<i32>} : memref<1x8x512xf32, #tpu.memory_space<vmem>>, vector<1x8x512xf32>,
    return
  }
  func.func @transform_0(%arg0: i32) -> (i32, i32, i32) {
    %c0_i32 = arith.constant 0 : i32
    %c0_i32_0 = arith.constant 0 : i32
    %c0_i32_1 = arith.constant 0 : i32
    return %arg0, %c0_i32, %c0_i32_0 : i32, i32, i32
  }
  func.func @transform_1(%arg0: i32) -> (i32, i32, i32) {
    %c0_i32 = arith.constant 0 : i32
    %c0_i32_0 = arith.constant 0 : i32
    %c0_i32_1 = arith.constant 0 : i32
    return %arg0, %c0_i32, %c0_i32_0 : i32, i32, i32
  }
  func.func @transform_2(%arg0: i32) -> (i32, i32, i32) {
    %c0_i32 = arith.constant 0 : i32
    %c0_i32_0 = arith.constant 0 : i32
    %c0_i32_1 = arith.constant 0 : i32
    return %arg0, %c0_i32, %c0_i32_0 : i32, i32, i32
  }
  func.func @transform_3(%arg0: i32) -> (i32, i32) {
    %c0_i32 = arith.constant 0 : i32
    %c0_i32_0 = arith.constant 0 : i32
    %c0_i32_1 = arith.constant 0 : i32
    return %c0_i32, %c0_i32_0 : i32, i32
  }
  func.func @transform_4(%arg0: i32) -> (i32, i32) {
    %c0_i32 = arith.constant 0 : i32
    %c0_i32_0 = arith.constant 0 : i32
    %c0_i32_1 = arith.constant 0 : i32
    return %c0_i32, %c0_i32_0 : i32, i32
  }
  func.func @transform_5(%arg0: i32) -> (i32, i32) {
    %c0_i32 = arith.constant 0 : i32
    %c0_i32_0 = arith.constant 0 : i32
    %c0_i32_1 = arith.constant 0 : i32
    return %c0_i32, %c0_i32_0 : i32, i32
  }
  func.func @transform_6(%arg0: i32) -> (i32, i32, i32) {
    %c0_i32 = arith.constant 0 : i32
    %c0_i32_0 = arith.constant 0 : i32
    %c0_i32_1 = arith.constant 0 : i32
    return %arg0, %c0_i32, %c0_i32_0 : i32, i32, i32
  }
}

</mosaic_0001>

<bundles_post_ra>
// kernel: run.1
= control target key start
LH: loop header
LB: loop body
LE: loop exit
PB: predicated region body
PF: predicated region fallthrough
CT: control target
= control target key end

     0   :  { %11 = vsyncpa [#allocation5], 0  ;;  %s806_s0 = inlined_call_operand.vmem [shape: f32[1,8,128], index: 0, kind: input, shape index: {}]   ;;  %s807_s1 = inlined_call_operand.vmem [shape: f32[1,8,128], index: 1, kind: input, shape index: {}]   ;;  %s808_s2 = inlined_call_operand.vmem [shape: f32[1,8,8], index: 2, kind: input, shape index: {}]   ;;  %s809_s3 = inlined_call_operand.hbm [shape: f32[264,512], index: 3, kind: input, shape index: {}]   ;;  %s810_s4 = inlined_call_operand.hbm [shape: f32[152,128], index: 4, kind: input, shape index: {}]   ;;  %s811_s5 = inlined_call_operand.hbm [shape: f32[136,256], index: 5, kind: input, shape index: {}]   ;;  %s812_s6 = inlined_call_operand.vmem [shape: f32[1,8,512], index: 6, kind: output, shape index: {}]  }
   0x1   :  { %12 = vsyncpa [#allocation7], 0  ;;  %s36_s23 = sshll.u32 %s810_s4, 4  ;;  %s716_s24 = smov [#allocation6]   ;;  %s37_s23 = int_to_ptr.hbm [resolvable:$true] %s36_s23 }
   0x2   :  { %s38_s25 = sshll.u32 %s716_s24, 4  ;;  %s23_s28 = sshll.u32 %s809_s3, 4  ;;  %s39_s25 = int_to_ptr.vmem [resolvable:$true] %s38_s25  ;;  %s24_s28 = int_to_ptr.hbm [resolvable:$true] %s23_s28 }
   0x3   :  { %s717_s29 = smov 128   ;;  %s718_s30 = smov 8  }
   0x4   :  { %44 = dma.hbm_to_vmem [thread:$0]  %s37_s23, 2432, %s39_s25, [#allocation7], %s717_s29, %s717_s29, %s718_s30  }
   0x5   :  { %s719_s7 = smov [#allocation4]   ;;  %s720_s9 = smov 512  }
   0x6   :  { %s25_s8 = sshll.u32 %s719_s7, 4  ;;  %s721_s10 = smov 32   ;;  %s26_s8 = int_to_ptr.vmem [resolvable:$true] %s25_s8 }
   0x7   :  { %31 = dma.hbm_to_vmem [thread:$0]  %s24_s28, 16896, %s26_s8, [#allocation5], %s720_s9, %s720_s9, %s721_s10  }
   0x8   :  { %s49_s12 = sshll.u32 %s811_s5, 4  ;;  %s722_s13 = smov [#allocation8]   ;;  %s50_s12 = int_to_ptr.hbm [resolvable:$true] %s49_s12 }
   0x9   :  { %s51_s14 = sshll.u32 %s722_s13, 4  ;;  %s723_s15 = smov 256   ;;  %s52_s14 = int_to_ptr.vmem [resolvable:$true] %s51_s14 }
   0xa   :  { %s724_s3 = smov 16  }
   0xb   :  { %57 = dma.hbm_to_vmem [thread:$0]  %s50_s12, 4352, %s52_s14, [#allocation7], %s723_s15, %s723_s15, %s724_s3  }
   0xc   :  { %712 = dma.done.wait [#allocation5], 16896  }
   0xd   :  { %713 = vsyncadd [#allocation5], 4294950400 }
   0xe   :  { %714 = dma.done.wait [#allocation7], 6784  }
   0xf   :  { %715 = vsyncadd [#allocation7], 4294960512  ;;  %vm120_vm0 = vcmask 64512   ;;  %v772_v0 = vld [vmem:[%s807_s1] sm:$0xff]  ;;  %v94_v2 = vld [vmem:[#allocation6 + $0x78] sm:$0xff] }
  0x10   :  { %v119_v1 = vld [vmem:[%s808_s2] sm:$0xff]  ;;  %139 = vmatpush.msra.mxu1 %v772_v0  ;;  %97 = vmatpush.msra.mxu0 %v94_v2  ;;  %v93_v3 = vld [vmem:[#allocation6 + $0x70] sm:$0xff]  ;;  %v92_v4 = vld [vmem:[#allocation6 + $0x68] sm:$0xff] }
  0x11   :  { %610 = vmatmul.msk.f32.vlgmr.msra.gmra.mxu1 %vm120_vm0, %v119_v1  ;;  %v91_v5 = vld [vmem:[#allocation6 + $0x60] sm:$0xff]  ;;  %v90_v6 = vld [vmem:[#allocation6 + $0x58] sm:$0xff]  ;;  %v89_v7 = vld [vmem:[#allocation6 + $0x50] sm:$0xff] }
  0x12   :  { %98 = vmatpush.msra.mxu0 %v93_v3  ;;  %v88_v8 = vld [vmem:[#allocation6 + $0x48] sm:$0xff]  ;;  %v87_v9 = vld [vmem:[#allocation6 + $0x40] sm:$0xff]  ;;  %v86_v10 = vld [vmem:[#allocation6 + $0x38] sm:$0xff] }
  0x13   :  { %v85_v11 = vld [vmem:[#allocation6 + $0x30] sm:$0xff]  ;;  %v84_v12 = vld [vmem:[#allocation6 + $0x28] sm:$0xff]  ;;  %v83_v13 = vld [vmem:[#allocation6 + $0x20] sm:$0xff] }
  0x14   :  { %99 = vmatpush.msra.mxu0 %v92_v4  ;;  %v82_v14 = vld [vmem:[#allocation6 + $0x18] sm:$0xff]  ;;  %v81_v15 = vld [vmem:[#allocation6 + $0x10] sm:$0xff]  ;;  %v80_v16 = vld [vmem:[#allocation6 + $0x8] sm:$0xff] }
  0x15   :  { %v79_v17 = vld [vmem:[#allocation6] sm:$0xff]  ;;  %v218_v20 = vld [vmem:[#allocation4 + $0x1e8] sm:$0xff] }
  0x16   :  { %100 = vmatpush.msra.mxu0 %v91_v5  ;;  %v78_v18 = vld [vmem:[%s806_s0] sm:$0xff]  ;;  %336 = vmatpush.msrb.mxu1 %v218_v20  ;;  %v214_v23 = vld [vmem:[#allocation4 + $0x1c8] sm:$0xff]  ;;  %v220_v20 = vld [vmem:[#allocation4 + $0x1f8] sm:$0xff] }
  0x17   :  { %v217_v19 = vld [vmem:[#allocation4 + $0x1e0] sm:$0xff]  ;;  %v282_v24 = vld [vmem:[#allocation4 + $0x3e8] sm:$0xff] }
  0x18   :  { %101 = vmatpush.msra.mxu0 %v90_v6  ;;  %296 = vmatpush.msra.mxu2 %v217_v19  ;;  %v213_v21 = vld [vmem:[#allocation4 + $0x1c0] sm:$0xff]  ;;  %v210_v27 = vld [vmem:[#allocation4 + $0x1a8] sm:$0xff] }
  0x19   :  { %v281_v22 = vld [vmem:[#allocation4 + $0x3e0] sm:$0xff]  ;;  %v278_v28 = vld [vmem:[#allocation4 + $0x3c8] sm:$0xff]  ;;  %337 = vmatpush.msrb.mxu1 %v214_v23  ;;  %v215_v23 = vld [vmem:[#allocation4 + $0x1d0] sm:$0xff] }
  0x1a   :  { %102 = vmatpush.msra.mxu0 %v89_v7  ;;  %v209_v25 = vld [vmem:[#allocation4 + $0x1a0] sm:$0xff]  ;;  %297 = vmatpush.msra.mxu2 %v213_v21  ;;  %v206_v31 = vld [vmem:[#allocation4 + $0x188] sm:$0xff] }
  0x1b   :  { %316 = vmatpush.msra.mxu3 %v281_v22  ;;  %v277_v26 = vld [vmem:[#allocation4 + $0x3c0] sm:$0xff]  ;;  %v274_v32 = vld [vmem:[#allocation4 + $0x3a8] sm:$0xff]  ;;  %338 = vmatpush.msrb.mxu1 %v210_v27  ;;  %v211_v27 = vld [vmem:[#allocation4 + $0x1b0] sm:$0xff] }
  0x1c   :  { %103 = vmatpush.msra.mxu0 %v88_v8  ;;  %v205_v29 = vld [vmem:[#allocation4 + $0x180] sm:$0xff]  ;;  %298 = vmatpush.msra.mxu2 %v209_v25  ;;  %v202_v35 = vld [vmem:[#allocation4 + $0x168] sm:$0xff]  ;;  %v216_v25 = vld [vmem:[#allocation4 + $0x1d8] sm:$0xff] }
  0x1d   :  { %v273_v30 = vld [vmem:[#allocation4 + $0x3a0] sm:$0xff]  ;;  %317 = vmatpush.msra.mxu3 %v277_v26  ;;  %v270_v36 = vld [vmem:[#allocation4 + $0x388] sm:$0xff]  ;;  %339 = vmatpush.msrb.mxu1 %v206_v31  ;;  %v284_v26 = vld [vmem:[#allocation4 + $0x3f8] sm:$0xff] }
  0x1e   :  { %104 = vmatpush.msra.mxu0 %v87_v9  ;;  %v201_v33 = vld [vmem:[#allocation4 + $0x160] sm:$0xff]  ;;  %299 = vmatpush.msra.mxu2 %v205_v29  ;;  %v198_v39 = vld [vmem:[#allocation4 + $0x148] sm:$0xff]  ;;  %v212_v29 = vld [vmem:[#allocation4 + $0x1b8] sm:$0xff] }
  0x1f   :  { %v269_v34 = vld [vmem:[#allocation4 + $0x380] sm:$0xff]  ;;  %318 = vmatpush.msra.mxu3 %v273_v30  ;;  %v266_v40 = vld [vmem:[#allocation4 + $0x368] sm:$0xff]  ;;  %340 = vmatpush.msrb.mxu1 %v202_v35  ;;  %v280_v30 = vld [vmem:[#allocation4 + $0x3d8] sm:$0xff] }
  0x20   :  { %105 = vmatpush.msra.mxu0 %v86_v10  ;;  %v197_v37 = vld [vmem:[#allocation4 + $0x140] sm:$0xff]  ;;  %300 = vmatpush.msra.mxu2 %v201_v33  ;;  %v194_v43 = vld [vmem:[#allocation4 + $0x128] sm:$0xff]  ;;  %v207_v31 = vld [vmem:[#allocation4 + $0x190] sm:$0xff] }
  0x21   :  { %v265_v38 = vld [vmem:[#allocation4 + $0x360] sm:$0xff]  ;;  %319 = vmatpush.msra.mxu3 %v269_v34  ;;  %v262_v44 = vld [vmem:[#allocation4 + $0x348] sm:$0xff]  ;;  %341 = vmatpush.msrb.mxu1 %v198_v39  ;;  %v208_v33 = vld [vmem:[#allocation4 + $0x198] sm:$0xff] }
  0x22   :  { %106 = vmatpush.msra.mxu0 %v85_v11  ;;  %v193_v41 = vld [vmem:[#allocation4 + $0x120] sm:$0xff]  ;;  %301 = vmatpush.msra.mxu2 %v197_v37  ;;  %v190_v47 = vld [vmem:[#allocation4 + $0x108] sm:$0xff]  ;;  %v276_v34 = vld [vmem:[#allocation4 + $0x3b8] sm:$0xff] }
  0x23   :  { %v261_v42 = vld [vmem:[#allocation4 + $0x340] sm:$0xff]  ;;  %320 = vmatpush.msra.mxu3 %v265_v38  ;;  %v258_v48 = vld [vmem:[#allocation4 + $0x328] sm:$0xff]  ;;  %342 = vmatpush.msrb.mxu1 %v194_v43  ;;  %v203_v35 = vld [vmem:[#allocation4 + $0x170] sm:$0xff] }
  0x24   :  { %107 = vmatpush.msra.mxu0 %v84_v12  ;;  %v189_v45 = vld [vmem:[#allocation4 + $0x100] sm:$0xff]  ;;  %302 = vmatpush.msra.mxu2 %v193_v41  ;;  %v186_v51 = vld [vmem:[#allocation4 + $0xe8] sm:$0xff]  ;;  %v204_v37 = vld [vmem:[#allocation4 + $0x178] sm:$0xff] }
  0x25   :  { %v257_v46 = vld [vmem:[#allocation4 + $0x320] sm:$0xff]  ;;  %321 = vmatpush.msra.mxu3 %v261_v42  ;;  %v254_v52 = vld [vmem:[#allocation4 + $0x308] sm:$0xff]  ;;  %343 = vmatpush.msrb.mxu1 %v190_v47  ;;  %v272_v38 = vld [vmem:[#allocation4 + $0x398] sm:$0xff] }
  0x26   :  { %108 = vmatpush.msra.mxu0 %v83_v13  ;;  %v185_v49 = vld [vmem:[#allocation4 + $0xe0] sm:$0xff]  ;;  %303 = vmatpush.msra.mxu2 %v189_v45  ;;  %v182_v55 = vld [vmem:[#allocation4 + $0xc8] sm:$0xff]  ;;  %v199_v39 = vld [vmem:[#allocation4 + $0x150] sm:$0xff] }
  0x27   :  { %v253_v50 = vld [vmem:[#allocation4 + $0x300] sm:$0xff]  ;;  %322 = vmatpush.msra.mxu3 %v257_v46  ;;  %v250_v56 = vld [vmem:[#allocation4 + $0x2e8] sm:$0xff]  ;;  %344 = vmatpush.msrb.mxu1 %v186_v51  ;;  %v200_v41 = vld [vmem:[#allocation4 + $0x158] sm:$0xff] }
  0x28   :  { %109 = vmatpush.msra.mxu0 %v82_v14  ;;  %v181_v53 = vld [vmem:[#allocation4 + $0xc0] sm:$0xff]  ;;  %304 = vmatpush.msra.mxu2 %v185_v49  ;;  %v178_v59 = vld [vmem:[#allocation4 + $0xa8] sm:$0xff]  ;;  %v268_v42 = vld [vmem:[#allocation4 + $0x378] sm:$0xff] }
  0x29   :  { %v249_v54 = vld [vmem:[#allocation4 + $0x2e0] sm:$0xff]  ;;  %323 = vmatpush.msra.mxu3 %v253_v50  ;;  %v246_v60 = vld [vmem:[#allocation4 + $0x2c8] sm:$0xff]  ;;  %345 = vmatpush.msrb.mxu1 %v182_v55  ;;  %v195_v43 = vld [vmem:[#allocation4 + $0x130] sm:$0xff] }
  0x2a   :  { %110 = vmatpush.msra.mxu0 %v81_v15  ;;  %v177_v57 = vld [vmem:[#allocation4 + $0xa0] sm:$0xff]  ;;  %305 = vmatpush.msra.mxu2 %v181_v53  ;;  %v174_v63 = vld [vmem:[#allocation4 + $0x88] sm:$0xff]  ;;  %v196_v45 = vld [vmem:[#allocation4 + $0x138] sm:$0xff] }
  0x2b   :  { %v245_v58 = vld [vmem:[#allocation4 + $0x2c0] sm:$0xff]  ;;  %324 = vmatpush.msra.mxu3 %v249_v54  ;;  %v242_v1 = vld [vmem:[#allocation4 + $0x2a8] sm:$0xff]  ;;  %346 = vmatpush.msrb.mxu1 %v178_v59  ;;  %v264_v46 = vld [vmem:[#allocation4 + $0x358] sm:$0xff] }
  0x2c   :  { %111 = vmatpush.msra.mxu0 %v80_v16  ;;  %v173_v61 = vld [vmem:[#allocation4 + $0x80] sm:$0xff]  ;;  %306 = vmatpush.msra.mxu2 %v177_v57  ;;  %v170_v4 = vld [vmem:[#allocation4 + $0x68] sm:$0xff]  ;;  %v191_v47 = vld [vmem:[#allocation4 + $0x110] sm:$0xff] }
  0x2d   :  { %v241_v62 = vld [vmem:[#allocation4 + $0x2a0] sm:$0xff]  ;;  %325 = vmatpush.msra.mxu3 %v245_v58  ;;  %v238_v5 = vld [vmem:[#allocation4 + $0x288] sm:$0xff]  ;;  %347 = vmatpush.msrb.mxu1 %v174_v63  ;;  %v192_v49 = vld [vmem:[#allocation4 + $0x118] sm:$0xff] }
  0x2e   :  { %112 = vmatpush.msra.mxu0 %v79_v17  ;;  %v169_v2 = vld [vmem:[#allocation4 + $0x60] sm:$0xff]  ;;  %307 = vmatpush.msra.mxu2 %v173_v61  ;;  %v166_v8 = vld [vmem:[#allocation4 + $0x48] sm:$0xff]  ;;  %v260_v50 = vld [vmem:[#allocation4 + $0x338] sm:$0xff] }
  0x2f   :  { %113 = vmatmul.f32.vlgmr.msra.gmra.mxu0 %v78_v18  ;;  %v237_v3 = vld [vmem:[#allocation4 + $0x280] sm:$0xff]  ;;  %326 = vmatpush.msra.mxu3 %v241_v62  ;;  %v234_v9 = vld [vmem:[#allocation4 + $0x268] sm:$0xff]  ;;  %v219_v18 = vld [vmem:[#allocation4 + $0x1f0] sm:$0xff] }
  0x30   :  { %356 = vmatpush.msrb.mxu0 %v282_v24  ;;  %v165_v6 = vld [vmem:[#allocation4 + $0x40] sm:$0xff]  ;;  %308 = vmatpush.msra.mxu2 %v169_v2  ;;  %v162_v12 = vld [vmem:[#allocation4 + $0x28] sm:$0xff]  ;;  %v283_v24 = vld [vmem:[#allocation4 + $0x3f0] sm:$0xff] }
  0x31   :  { %v233_v7 = vld [vmem:[#allocation4 + $0x260] sm:$0xff]  ;;  %327 = vmatpush.msra.mxu3 %v237_v3  ;;  %348 = vmatpush.msrb.mxu1 %v170_v4  ;;  %v230_v13 = vld [vmem:[#allocation4 + $0x248] sm:$0xff]  ;;  %v187_v51 = vld [vmem:[#allocation4 + $0xf0] sm:$0xff] }
  0x32   :  { %357 = vmatpush.msrb.mxu0 %v278_v28  ;;  %v161_v10 = vld [vmem:[#allocation4 + $0x20] sm:$0xff]  ;;  %309 = vmatpush.msra.mxu2 %v165_v6  ;;  %v158_v16 = vld [vmem:[#allocation4 + $0x8] sm:$0xff]  ;;  %v279_v28 = vld [vmem:[#allocation4 + $0x3d0] sm:$0xff] }
  0x33   :  { %v229_v11 = vld [vmem:[#allocation4 + $0x240] sm:$0xff]  ;;  %328 = vmatpush.msra.mxu3 %v233_v7  ;;  %349 = vmatpush.msrb.mxu1 %v166_v8  ;;  %v226_v17 = vld [vmem:[#allocation4 + $0x228] sm:$0xff]  ;;  %v188_v53 = vld [vmem:[#allocation4 + $0xf8] sm:$0xff] }
  0x34   :  { %358 = vmatpush.msrb.mxu0 %v274_v32  ;;  %v157_v14 = vld [vmem:[#allocation4] sm:$0xff]  ;;  %310 = vmatpush.msra.mxu2 %v161_v10  ;;  %v222_v22 = vld [vmem:[#allocation4 + $0x208] sm:$0xff]  ;;  %v275_v32 = vld [vmem:[#allocation4 + $0x3b0] sm:$0xff] }
  0x35   :  { %v225_v15 = vld [vmem:[#allocation4 + $0x220] sm:$0xff]  ;;  %329 = vmatpush.msra.mxu3 %v229_v11  ;;  %350 = vmatpush.msrb.mxu1 %v162_v12  ;;  %v256_v54 = vld [vmem:[#allocation4 + $0x318] sm:$0xff]  ;;  %v183_v55 = vld [vmem:[#allocation4 + $0xd0] sm:$0xff] }
  0x36   :  { %359 = vmatpush.msrb.mxu0 %v270_v36  ;;  %311 = vmatpush.msra.mxu2 %v157_v14  ;;  %v221_v21 = vld [vmem:[#allocation4 + $0x200] sm:$0xff]  ;;  %v271_v36 = vld [vmem:[#allocation4 + $0x390] sm:$0xff]  ;;  %v184_v57 = vld [vmem:[#allocation4 + $0xd8] sm:$0xff] }
  0x37   :  { %330 = vmatpush.msra.mxu3 %v225_v15  ;;  %351 = vmatpush.msrb.mxu1 %v158_v16  ;;  %v252_v58 = vld [vmem:[#allocation4 + $0x2f8] sm:$0xff]  ;;  %v179_v59 = vld [vmem:[#allocation4 + $0xb0] sm:$0xff]  ;;  %v74_v8 = vld [vmem:[#allocation6 + $0x88] sm:$0xff] }
  0x38   :  { %360 = vmatpush.msrb.mxu0 %v266_v40  ;;  %376 = vmatpush.msrb.mxu2 %v219_v18  ;;  %v267_v40 = vld [vmem:[#allocation4 + $0x370] sm:$0xff]  ;;  %v180_v61 = vld [vmem:[#allocation4 + $0xb8] sm:$0xff] }
  0x39   :  { %416 = vmatpush.msra.mxu1 %v220_v20  ;;  %331 = vmatpush.msra.mxu3 %v221_v21  ;;  %v248_v62 = vld [vmem:[#allocation4 + $0x2d8] sm:$0xff]  ;;  %v175_v63 = vld [vmem:[#allocation4 + $0x90] sm:$0xff] }
  0x3a   :  { %361 = vmatpush.msrb.mxu0 %v262_v44  ;;  %377 = vmatpush.msrb.mxu2 %v215_v23  ;;  %v263_v44 = vld [vmem:[#allocation4 + $0x350] sm:$0xff]  ;;  %v176_v2 = vld [vmem:[#allocation4 + $0x98] sm:$0xff] }
  0x3b   :  { %396 = vmatpush.msrb.mxu3 %v283_v24  ;;  %417 = vmatpush.msra.mxu1 %v216_v25  ;;  %v244_v3 = vld [vmem:[#allocation4 + $0x2b8] sm:$0xff]  ;;  %v171_v4 = vld [vmem:[#allocation4 + $0x70] sm:$0xff] }
  0x3c   :  { %362 = vmatpush.msrb.mxu0 %v258_v48  ;;  %378 = vmatpush.msrb.mxu2 %v211_v27  ;;  %v259_v48 = vld [vmem:[#allocation4 + $0x330] sm:$0xff]  ;;  %v172_v6 = vld [vmem:[#allocation4 + $0x78] sm:$0xff]  ;;  %v623_v27 = vld [vmem:[#allocation6 + $0x80] ss:$0 sm:$0xff] }
  0x3d   :  { %397 = vmatpush.msrb.mxu3 %v279_v28  ;;  %418 = vmatpush.msra.mxu1 %v212_v29  ;;  %v240_v7 = vld [vmem:[#allocation4 + $0x298] sm:$0xff]  ;;  %v235_v10 = vld [vmem:[#allocation4 + $0x270] sm:$0xff] }
  0x3e   :  { %363 = vmatpush.msrb.mxu0 %v254_v52  ;;  %379 = vmatpush.msrb.mxu2 %v207_v31  ;;  %v255_v52 = vld [vmem:[#allocation4 + $0x310] sm:$0xff]  ;;  %v168_v11 = vld [vmem:[#allocation4 + $0x58] sm:$0xff] }
  0x3f   :  { %398 = vmatpush.msrb.mxu3 %v275_v32  ;;  %419 = vmatpush.msra.mxu1 %v208_v33  ;;  %v236_v12 = vld [vmem:[#allocation4 + $0x278] sm:$0xff]  ;;  %v231_v14 = vld [vmem:[#allocation4 + $0x250] sm:$0xff] }
  0x40   :  { %364 = vmatpush.msrb.mxu0 %v250_v56  ;;  %380 = vmatpush.msrb.mxu2 %v203_v35  ;;  %v251_v56 = vld [vmem:[#allocation4 + $0x2f0] sm:$0xff]  ;;  %v164_v15 = vld [vmem:[#allocation4 + $0x38] sm:$0xff] }
  0x41   :  { %399 = vmatpush.msrb.mxu3 %v271_v36  ;;  %420 = vmatpush.msra.mxu1 %v204_v37  ;;  %v232_v16 = vld [vmem:[#allocation4 + $0x258] sm:$0xff]  ;;  %v227_v18 = vld [vmem:[#allocation4 + $0x230] sm:$0xff]  ;;  %v549_v37 = vld [vmem:[#allocation8 + $0xf0] sm:$0xff] }
  0x42   :  { %365 = vmatpush.msrb.mxu0 %v246_v60  ;;  %381 = vmatpush.msrb.mxu2 %v199_v39  ;;  %v247_v60 = vld [vmem:[#allocation4 + $0x2d0] sm:$0xff]  ;;  %v228_v20 = vld [vmem:[#allocation4 + $0x238] sm:$0xff]  ;;  %v548_v39 = vld [vmem:[#allocation8 + $0xe8] sm:$0xff] }
  0x43   :  { %400 = vmatpush.msrb.mxu3 %v267_v40  ;;  %421 = vmatpush.msra.mxu1 %v200_v41  ;;  %v223_v21 = vld [vmem:[#allocation4 + $0x210] sm:$0xff]  ;;  %v545_v40 = vld [vmem:[#allocation8 + $0xd0] sm:$0xff] }
  0x44   :  { %366 = vmatpush.msrb.mxu0 %v242_v1  ;;  %382 = vmatpush.msrb.mxu2 %v195_v43  ;;  %v243_v1 = vld [vmem:[#allocation4 + $0x2b0] sm:$0xff]  ;;  %v543_v43 = vld [vmem:[#allocation8 + $0xc0] sm:$0xff] }
  0x45   :  { %401 = vmatpush.msrb.mxu3 %v263_v44  ;;  %422 = vmatpush.msra.mxu1 %v196_v45  ;;  %v546_v41 = vld [vmem:[#allocation8 + $0xd8] sm:$0xff]  ;;  %v544_v44 = vld [vmem:[#allocation8 + $0xc8] sm:$0xff] }
  0x46   :  { %367 = vmatpush.msrb.mxu0 %v238_v5  ;;  %383 = vmatpush.msrb.mxu2 %v191_v47  ;;  %v239_v5 = vld [vmem:[#allocation4 + $0x290] sm:$0xff] }
  0x47   :  { %402 = vmatpush.msrb.mxu3 %v259_v48  ;;  %423 = vmatpush.msra.mxu1 %v192_v49  ;;  %v542_v47 = vld [vmem:[#allocation8 + $0xb8] sm:$0xff]  ;;  %v539_v49 = vld [vmem:[#allocation8 + $0xa0] sm:$0xff] }
  0x48   :  { %368 = vmatpush.msrb.mxu0 %v234_v9  ;;  %384 = vmatpush.msrb.mxu2 %v187_v51  ;;  %v167_v9 = vld [vmem:[#allocation4 + $0x50] sm:$0xff] }
  0x49   :  { %403 = vmatpush.msrb.mxu3 %v255_v52  ;;  %424 = vmatpush.msra.mxu1 %v188_v53  ;;  %v537_v53 = vld [vmem:[#allocation8 + $0x90] sm:$0xff] }
  0x4a   :  { %369 = vmatpush.msrb.mxu0 %v230_v13  ;;  %385 = vmatpush.msrb.mxu2 %v183_v55  ;;  %v163_v13 = vld [vmem:[#allocation4 + $0x30] sm:$0xff] }
  0x4b   :  { %404 = vmatpush.msrb.mxu3 %v251_v56  ;;  %425 = vmatpush.msra.mxu1 %v184_v57  ;;  %v535_v57 = vld [vmem:[#allocation8 + $0x80] sm:$0xff] }
  0x4c   :  { %370 = vmatpush.msrb.mxu0 %v226_v17  ;;  %386 = vmatpush.msrb.mxu2 %v179_v59  ;;  %v159_v17 = vld [vmem:[#allocation4 + $0x10] sm:$0xff] }
  0x4d   :  { %405 = vmatpush.msrb.mxu3 %v247_v60  ;;  %426 = vmatpush.msra.mxu1 %v180_v61  ;;  %v533_v61 = vld [vmem:[#allocation8 + $0x70] sm:$0xff] }
  0x4e   :  { %371 = vmatpush.msrb.mxu0 %v222_v22  ;;  %387 = vmatpush.msrb.mxu2 %v175_v63  ;;  %v224_v22 = vld [vmem:[#allocation4 + $0x218] sm:$0xff] }
  0x4f   :  { %406 = vmatpush.msrb.mxu3 %v243_v1  ;;  %427 = vmatpush.msra.mxu1 %v176_v2 }
  0x50   :  { %436 = vmatpush.msra.mxu0 %v284_v26  ;;  %388 = vmatpush.msrb.mxu2 %v171_v4  ;;  %v532_v4 = vld [vmem:[#allocation8 + $0x68] sm:$0xff] }
  0x51   :  { %407 = vmatpush.msrb.mxu3 %v239_v5  ;;  %428 = vmatpush.msra.mxu1 %v172_v6 }
  0x52   :  { %437 = vmatpush.msra.mxu0 %v280_v30  ;;  %332 = vmatmul.f32.vlgmr.msra.gmra.mxu3 %v74_v8 }
  0x53   :  { %372 = vmatmul.f32.vlgmr.msrb.gmra.mxu0 %v74_v8  ;;  %389 = vmatpush.msrb.mxu2 %v167_v9  ;;  %v529_v9 = vld [vmem:[#allocation8 + $0x50] sm:$0xff] }
  0x54   :  { %438 = vmatpush.msra.mxu0 %v276_v34  ;;  %408 = vmatpush.msrb.mxu3 %v235_v10  ;;  %v530_v10 = vld [vmem:[#allocation8 + $0x58] sm:$0xff] }
  0x55   :  { %429 = vmatpush.msra.mxu1 %v168_v11  ;;  %390 = vmatpush.msrb.mxu2 %v163_v13  ;;  %v527_v13 = vld [vmem:[#allocation8 + $0x40] sm:$0xff] }
  0x56   :  { %439 = vmatpush.msra.mxu0 %v272_v38  ;;  %409 = vmatpush.msrb.mxu3 %v231_v14  ;;  %v550_v38 = vld [vmem:[#allocation8 + $0xf8] sm:$0xff]  ;;  %v528_v14 = vld [vmem:[#allocation8 + $0x48] sm:$0xff] }
  0x57   :  { %430 = vmatpush.msra.mxu1 %v164_v15  ;;  %391 = vmatpush.msrb.mxu2 %v159_v17  ;;  %v525_v15 = vld [vmem:[#allocation8 + $0x30] sm:$0xff] }
  0x58   :  { %440 = vmatpush.msra.mxu0 %v268_v42  ;;  %410 = vmatpush.msrb.mxu3 %v227_v18  ;;  %v782_v42 = vld [vmem:[#allocation4 + $0x400] ss:$8 sm:$0xf] }
  0x59   :  { %v289_v45 = vperm.slane %v782_v42, 1  ;;  %v288_v56 = vperm.slane %v782_v42, 0  ;;  %v291_v60 = vperm.slane %v782_v42, 3 }
  0x5a   :  { %441 = vmatpush.msra.mxu0 %v264_v46  ;;  %411 = vmatpush.msrb.mxu3 %v223_v21  ;;  %v541_v46 = vld [vmem:[#allocation8 + $0xb0] sm:$0xff] }
  0x5b   :  { %412 = vmatmul.f32.vlgmr.msrb.gmra.mxu3 %v74_v8 }
  0x5c   :  { %442 = vmatpush.msra.mxu0 %v260_v50  ;;  %578 = vmatpush.msra.mxu3 %v550_v38  ;;  %v540_v50 = vld [vmem:[#allocation8 + $0xa8] sm:$0xff] }
  0x5e   :  { %443 = vmatpush.msra.mxu0 %v256_v54  ;;  %579 = vmatpush.msra.mxu3 %v548_v39  ;;  %v538_v54 = vld [vmem:[#allocation8 + $0x98] sm:$0xff] }
  0x60   :  { %444 = vmatpush.msra.mxu0 %v252_v58  ;;  %580 = vmatpush.msra.mxu3 %v546_v41  ;;  %v536_v58 = vld [vmem:[#allocation8 + $0x88] sm:$0xff] }
  0x62   :  { %445 = vmatpush.msra.mxu0 %v248_v62  ;;  %581 = vmatpush.msra.mxu3 %v544_v44  ;;  %v534_v62 = vld [vmem:[#allocation8 + $0x78] sm:$0xff] }
  0x64   :  { %446 = vmatpush.msra.mxu0 %v244_v3  ;;  %582 = vmatpush.msra.mxu3 %v542_v47  ;;  %v531_v3 = vld [vmem:[#allocation8 + $0x60] sm:$0xff] }
  0x66   :  { %447 = vmatpush.msra.mxu0 %v240_v7  ;;  %583 = vmatpush.msra.mxu3 %v540_v50 }
  0x68   :  { %448 = vmatpush.msra.mxu0 %v236_v12  ;;  %584 = vmatpush.msra.mxu3 %v538_v54  ;;  %v76_v54 = vld [vmem:[#allocation6 + $0x90] sm:$0xff] }
  0x6a   :  { %449 = vmatpush.msra.mxu0 %v232_v16  ;;  %585 = vmatpush.msra.mxu3 %v536_v58  ;;  %v526_v16 = vld [vmem:[#allocation8 + $0x38] sm:$0xff] }
  0x6c   :  { %450 = vmatpush.msra.mxu0 %v228_v20  ;;  %586 = vmatpush.msra.mxu3 %v534_v62  ;;  %v524_v20 = vld [vmem:[#allocation8 + $0x28] sm:$0xff] }
  0x6e   :  { %451 = vmatpush.msra.mxu0 %v224_v22  ;;  %587 = vmatpush.msra.mxu3 %v532_v4  ;;  %v521_v22 = vld [vmem:[#allocation8 + $0x10] sm:$0xff] }
  0x6f   :  { %452 = vmatmul.f32.vlgmr.msra.gmra.mxu0 %v74_v8 }
  0x70   :  { %588 = vmatpush.msra.mxu3 %v530_v10 }
  0x72   :  { %589 = vmatpush.msra.mxu3 %v528_v14 }
  0x74   :  { %590 = vmatpush.msra.mxu3 %v526_v16 }
  0x76   :  { %591 = vmatpush.msra.mxu3 %v524_v20 }
  0x8e   :  { %v141_v19 = vpop.f32.mrf.mxu1 }
  0x8f   :  { %144 = vadd.xlane.f32.xlu0 %v141_v19  ;;  %v160_v19 = vld [vmem:[#allocation4 + $0x18] sm:$0xff] }
  0x90   :  { %431 = vmatpush.msra.mxu1 %v160_v19  ;;  %v523_v19 = vld [vmem:[#allocation8 + $0x20] sm:$0xff] }
  0xac   :  { %v114_v28 = vpop.f32.mrf.mxu0 }
  0xad   :  { %v115_v31 = vadd.f32 %v623_v27, %v114_v28  ;;  %v290_v28 = vperm.slane %v782_v42, 2 }
  0xaf   :  { %v117_v33 = vmax.f32 %v115_v31, 0.0 }
  0xd0   :  { %v373_v48 = vpop.f32.mrf.mxu0 }
  0xd5   :  { %v333_v1 = vpop.f32.mrf.mxu3 }
  0xec   :  { %v453_v6 = vpop.f32.mrf.mxu0 }
 0x102   :  { %v145_v23 = vpop.xlane.xlu0 %144 }
 0x103   :  { %v146_v24 = vmul.f32 %v145_v23, %v772_v0  ;;  %v547_v0 = vld [vmem:[#allocation8 + $0xe0] sm:$0xff]  ;;  %v522_v23 = vld [vmem:[#allocation8 + $0x18] sm:$0xff] }
 0x104   :  { %592 = vmatpush.msra.mxu3 %v522_v23 }
 0x105   :  { %v147_v25 = vrot.slane %v146_v24, 4 }
 0x107   :  { %v148_v26 = vadd.f32 %v147_v25, %v146_v24  ;;  %v519_v24 = vld [vmem:[#allocation8] sm:$0xff]  ;;  %v520_v25 = vld [vmem:[#allocation8 + $0x8] sm:$0xff] }
 0x108   :  { %593 = vmatpush.msra.mxu3 %v520_v25 }
 0x109   :  { %v149_v29 = vrot.slane %v148_v26, 2 }
 0x10b   :  { %v150_v30 = vadd.f32 %v149_v29, %v148_v26 }
 0x10d   :  { %v151_v32 = vrot.slane %v150_v30, 1 }
 0x10f   :  { %v152_v34 = vadd.f32 %v151_v32, %v150_v30 }
 0x111   :  { %v153_v35 = vsub.f32 0.0, %v152_v34 }
 0x113   :  { %v154_v36 = vadd.f32 %v153_v35, %v117_v33 }
 0x115   :  { %312 = vmatmul.f32.vlgmr.msra.gmra.mxu2 %v154_v36  ;;  %352 = vmatmul.f32.vlgmr.msrb.gmra.mxu1 %v154_v36 }
 0x116   :  { %558 = vmatpush.msra.mxu2 %v549_v37 }
 0x118   :  { %559 = vmatpush.msra.mxu2 %v547_v0 }
 0x11a   :  { %560 = vmatpush.msra.mxu2 %v545_v40 }
 0x11c   :  { %561 = vmatpush.msra.mxu2 %v543_v43 }
 0x11d   :  { %392 = vmatmul.f32.vlgmr.msrb.gmra.mxu2 %v154_v36  ;;  %432 = vmatmul.f32.vlgmr.msra.gmra.mxu1 %v154_v36  ;;  %v413_v36 = vpop.f32.mrf.mxu3 }
 0x11e   :  { %562 = vmatpush.msra.mxu2 %v541_v46 }
 0x120   :  { %563 = vmatpush.msra.mxu2 %v539_v49 }
 0x122   :  { %564 = vmatpush.msra.mxu2 %v537_v53 }
 0x124   :  { %565 = vmatpush.msra.mxu2 %v535_v57 }
 0x126   :  { %566 = vmatpush.msra.mxu2 %v533_v61 }
 0x128   :  { %567 = vmatpush.msra.mxu2 %v531_v3 }
 0x12a   :  { %568 = vmatpush.msra.mxu2 %v529_v9  ;;  %v552_v9 = vld [vmem:[#allocation8 + $0x100] ss:$8 sm:$0x3] }
 0x12b   :  { %v554_v10 = vperm.slane %v552_v9, 0 }
 0x12c   :  { %569 = vmatpush.msra.mxu2 %v527_v13 }
 0x12e   :  { %570 = vmatpush.msra.mxu2 %v525_v15 }
 0x130   :  { %571 = vmatpush.msra.mxu2 %v523_v19 }
 0x132   :  { %572 = vmatpush.msra.mxu2 %v521_v22 }
 0x134   :  { %573 = vmatpush.msra.mxu2 %v519_v24 }
 0x192   :  { %v353_v51 = vpop.f32.mrf.mxu1 }
 0x193   :  { %v354_v52 = vadd.f32 %v353_v51, %v289_v45 }
 0x195   :  { %v374_v55 = vadd.f32 %v373_v48, %v354_v52 }
 0x197   :  { %v612_v59 = vmul.f32 -1.442695, %v374_v55 }
 0x198   :  { %v313_v63 = vpop.f32.mrf.mxu2 }
 0x199   :  { %624 = vpow2.f32 %v612_v59  ;;  %v314_v2 = vadd.f32 %v313_v63, %v288_v56 }
 0x19a   :  { %v433_v5 = vpop.f32.mrf.mxu1 }
 0x19b   :  { %v334_v7 = vadd.f32 %v333_v1, %v314_v2  ;;  %v434_v8 = vadd.f32 %v433_v5, %v291_v60 }
 0x19d   :  { %v611_v11 = vmul.f32 -1.442695, %v334_v7  ;;  %v454_v12 = vadd.f32 %v453_v6, %v434_v8 }
 0x19f   :  { %v625_v17 = vpop.eup %624  ;;  %626 = vpow2.f32 %v611_v11  ;;  %v613_v18 = vmul.f32 -1.442695, %v454_v12  ;;  %v555_v11 = vperm.slane %v552_v9, 1 }
 0x1a0   :  { %v478_v21 = vadd.f32 1.0, %v625_v17  ;;  %v393_v30 = vpop.f32.mrf.mxu2 }
 0x1a1   :  { %628 = vpow2.f32 %v613_v18  ;;  %v394_v34 = vadd.f32 %v393_v30, %v290_v28 }
 0x1a2   :  { %630 = vrcp.f32 %v478_v21  ;;  %v490_v42 = vand.u32 2147483648, %v478_v21  ;;  %vm484_vm2 = vweird.f32 %v478_v21  ;;  %v488_v45 = vand.u32 2147483647, %v478_v21 }
 0x1a3   :  { %v414_v0 = vadd.f32 %v413_v36, %v394_v34 }
 0x1a4   :  { %v491_v51 = vor.u32 1.1754944e-38, %v490_v42  ;;  %vm489_vm6 = vcmp.eq.f32.partialorder %v488_v45, 8.507059e+37 }
 0x1a5   :  { %v627_v26 = vpop.eup %626 }
 0x1a6   :  { %v459_v27 = vadd.f32 1.0, %v627_v26 }
 0x1a7   :  { %v629_v29 = vpop.eup %628 }
 0x1a8   :  { %v631_v31 = vpop.eup %630  ;;  %632 = vrcp.f32 %v459_v27  ;;  %v498_v32 = vadd.f32 1.0, %v629_v29  ;;  %v471_v47 = vand.u32 2147483648, %v459_v27  ;;  %v469_v49 = vand.u32 2147483647, %v459_v27 }
 0x1a9   :  { %v480_v33 = vmul.f32 %v631_v31, %v478_v21  ;;  %vm485_vm1 = vweird.f32 %v631_v31  ;;  %vm465_vm5 = vweird.f32 %v459_v27 }
 0x1aa   :  { %634 = vrcp.f32 %v498_v32  ;;  %vm788_vm3 = vmor %vm484_vm2, %vm485_vm1  ;;  %v472_v55 = vor.u32 1.1754944e-38, %v471_v47  ;;  %vm470_vm8 = vcmp.eq.f32.partialorder %v469_v49, 8.507059e+37  ;;  %v510_v2 = vand.u32 2147483648, %v498_v32 }
 0x1ab   :  { %v481_v35 = vsub.f32 1.0, %v480_v33  ;;  %636 = vtanh.f32 %v414_v0  ;;  %vm504_vm10 = vweird.f32 %v498_v32  ;;  %v508_v3 = vand.u32 2147483647, %v498_v32 }
 0x1ac   :  { %v511_v5 = vor.u32 1.1754944e-38, %v510_v2 }
 0x1ad   :  { %v482_v37 = vmul.f32 %v631_v31, %v481_v35  ;;  %vm509_vm12 = vcmp.eq.f32.partialorder %v508_v3, 8.507059e+37 }
 0x1ae   :  { %v633_v38 = vpop.eup %632 }
 0x1af   :  { %v461_v39 = vmul.f32 %v633_v38, %v459_v27  ;;  %v483_v40 = vadd.f32 %v631_v31, %v482_v37  ;;  %vm466_vm4 = vweird.f32 %v633_v38 }
 0x1b0   :  { %v635_v41 = vpop.eup %634  ;;  %vm467_vm7 = vmor %vm465_vm5, %vm466_vm4 }
 0x1b1   :  { %v462_v43 = vsub.f32 1.0, %v461_v39  ;;  %v500_v44 = vmul.f32 %v635_v41, %v498_v32  ;;  %v487_v50 = vsel %vm788_vm3, %v631_v31, %v483_v40  ;;  %v637_v58 = vpop.eup %636  ;;  %vm505_vm9 = vweird.f32 %v635_v41 }
 0x1b2   :  { %v492_v56 = vsel %vm489_vm6, %v491_v51, %v487_v50  ;;  %vm506_vm11 = vmor %vm504_vm10, %vm505_vm9 }
 0x1b3   :  { %v463_v48 = vmul.f32 %v633_v38, %v462_v43  ;;  %v501_v52 = vsub.f32 1.0, %v500_v44  ;;  %v514_v61 = vmul.f32 %v492_v56, %v76_v54 }
 0x1b5   :  { %v464_v53 = vadd.f32 %v633_v38, %v463_v48  ;;  %v502_v60 = vmul.f32 %v635_v41, %v501_v52 }
 0x1b7   :  { %v468_v57 = vsel %vm467_vm7, %v633_v38, %v464_v53  ;;  %v503_v1 = vadd.f32 %v635_v41, %v502_v60 }
 0x1b8   :  { %v473_v59 = vsel %vm470_vm8, %v472_v55, %v468_v57 }
 0x1b9   :  { %v515_v62 = vmul.f32 %v637_v58, %v473_v59  ;;  %v507_v4 = vsel %vm506_vm11, %v635_v41, %v503_v1 }
 0x1ba   :  { %v512_v7 = vsel %vm509_vm12, %v511_v5, %v507_v4 }
 0x1bb   :  { %v516_v63 = vadd.f32 %v515_v62, %v514_v61 }
 0x1bd   :  { %638 = vtanh.f32 %v516_v63  ;;  %601 = vst [vmem:[%s812_s6 + $0x8] sm:$0xff] %v516_v63 }
 0x1c3   :  { %v639_v6 = vpop.eup %638 }
 0x1c4   :  { %v518_v8 = vmul.f32 %v639_v6, %v512_v7 }
 0x1c6   :  { %574 = vmatmul.f32.vlgmr.msra.gmra.mxu2 %v518_v8  ;;  %600 = vst [vmem:[%s812_s6] sm:$0xff] %v518_v8  ;;  %594 = vmatmul.f32.vlgmr.msra.gmra.mxu3 %v518_v8 }
 0x249   :  { %v575_v12 = vpop.f32.mrf.mxu2  ;;  %v595_v13 = vpop.f32.mrf.mxu3 }
 0x24a   :  { %v576_v14 = vadd.f32 %v575_v12, %v554_v10  ;;  %v596_v15 = vadd.f32 %v595_v13, %v555_v11 }
 0x24c   :  { %602 = vst [vmem:[%s812_s6 + $0x10] sm:$0xff] %v576_v14 }
 0x24d   :  { %603 = vst [vmem:[%s812_s6 + $0x18] sm:$0xff] %v596_v15 }
 0x24e   :  { %608 = vsyncpa [#allocation5], 1 }
 0x24f   :  { %609 = vsyncpa [#allocation7], 1 }

</bundles_post_ra>
